<compile_context>
chip_gen: v5e
topology: v5e:2x2
jax: 0.10.0
libtpu: 0.0.40
codegen_flags: <defaults>
</compile_context>

<pallas_src>
import functools

import jax
import jax.numpy as jnp
from jax.experimental import pallas as pl
from jax.experimental.pallas import tpu as pltpu

# Small deterministic problem size consistent with the module's forward.
S, B, D_MODEL, NHEAD, D_FF = 8, 2, 32, 4, 64
HEAD_DIM = D_MODEL // NHEAD
EPS = 1e-5  # PyTorch LayerNorm default


def _layernorm(x, g, b):
    mu = jnp.mean(x, axis=-1, keepdims=True)
    var = jnp.mean((x - mu) ** 2, axis=-1, keepdims=True)
    return (x - mu) * jax.lax.rsqrt(var + EPS) * g + b


# --------------------------- Fused encoder kernel ----------------------------
def fused_encoder_kernel(x_ref, wqkv_ref, bqkv_ref, wo_ref, bo_ref,
                         g1_ref, be1_ref, w1_ref, b1_ref,
                         w2_ref, b2_ref, g2_ref, be2_ref, o_ref,
                         *, nhead, head_dim, batch, d_model):
    f32 = jnp.float32
    bf16 = jnp.bfloat16

    x = x_ref[...]                                    # (M, E) f32, row = s*B + b
    M = x.shape[0]

    # --- fused QKV projection (bf16 operands, f32 MXU accumulation) ----------
    qkv = jnp.dot(x.astype(bf16), wqkv_ref[...],
                  preferred_element_type=f32) + bqkv_ref[...]       # (M, 3E)

    # --- multi-head self attention, fully in VMEM/vregs ----------------------
    # Rows interleave batches; forbid cross-batch attention with an additive
    # mask so every head runs on the full (M, M) score block with no
    # wrapper-side head transposes.
    row_b = jax.lax.broadcasted_iota(jnp.int32, (M, M), 0) % batch
    col_b = jax.lax.broadcasted_iota(jnp.int32, (M, M), 1) % batch
    mask = jnp.where(row_b == col_b, f32(0.0), f32(-1e30))          # (M, M)

    qkv_bf = qkv.astype(bf16)
    head_outs = []
    for h in range(nhead):                            # static loop, nhead small
        lo = h * head_dim
        q_h = qkv_bf[:, lo:lo + head_dim]                           # (M, hd)
        k_h = qkv_bf[:, d_model + lo:d_model + lo + head_dim]       # (M, hd)
        v_h = qkv_bf[:, 2 * d_model + lo:2 * d_model + lo + head_dim]
        # 1/sqrt(head_dim) is already folded into the Q weights host-side.
        s = jax.lax.dot_general(q_h, k_h, (((1,), (1,)), ((), ())),
                                preferred_element_type=f32)         # (M, M)
        s = s + mask
        s = s - jnp.max(s, axis=-1, keepdims=True)
        p = jnp.exp(s)
        p = p * pl.reciprocal(jnp.sum(p, axis=-1, keepdims=True), approx=True)
        head_outs.append(jnp.dot(p.astype(bf16), v_h,
                                 preferred_element_type=f32))       # (M, hd)
    attn = jnp.concatenate(head_outs, axis=-1)                      # (M, E)

    # --- out_proj + residual + LayerNorm(d_model) -----------------------------
    src2 = jnp.dot(attn.astype(bf16), wo_ref[...],
                   preferred_element_type=f32) + bo_ref[...]
    x1 = x + src2
    xn = _layernorm(x1, g1_ref[...], be1_ref[...])

    # --- FFN: linear1 -> GELU -> linear2, residual on linear1 output, LN2 -----
    h1 = jnp.dot(xn.astype(bf16), w1_ref[...],
                 preferred_element_type=f32) + b1_ref[...]          # (M, dff)
    g = 0.5 * h1 * (1.0 + jax.lax.erf(h1 * 0.7071067811865476))     # exact GELU
    h2 = jnp.dot(g.astype(bf16), w2_ref[...],
                 preferred_element_type=f32) + b2_ref[...]          # (M, dff)
    y = h1 + h2
    o_ref[...] = _layernorm(y, g2_ref[...], be2_ref[...])


# --------------------------- Host-side param prep ----------------------------
def prepare_params(p):
    """One-time host-side prep: transpose weights to (in, out), fold the
    1/sqrt(head_dim) attention scale into the Q slice of in_proj, and pre-cast
    matmul weights to bfloat16 (f32 accumulation in-kernel). Biases / LN params
    stay float32."""
    scale = HEAD_DIM ** -0.5
    f32 = jnp.float32
    wqkv = p["in_proj_w"].T.astype(f32)               # (E, 3E)
    wqkv = wqkv.at[:, :D_MODEL].multiply(scale)
    bqkv = p["in_proj_b"].astype(f32)
    bqkv = bqkv.at[:D_MODEL].multiply(scale)
    return dict(
        wqkv=wqkv.astype(jnp.bfloat16),
        bqkv=bqkv.reshape(1, 3 * D_MODEL),
        wo=p["out_proj_w"].T.astype(jnp.bfloat16),
        bo=p["out_proj_b"].reshape(1, D_MODEL).astype(f32),
        g1=p["ln1_g"].reshape(1, D_MODEL).astype(f32),
        be1=p["ln1_b"].reshape(1, D_MODEL).astype(f32),
        w1=p["w1"].T.astype(jnp.bfloat16),
        b1=p["b1"].reshape(1, D_FF).astype(f32),
        w2=p["w2"].T.astype(jnp.bfloat16),
        b2=p["b2"].reshape(1, D_FF).astype(f32),
        g2=p["ln2_g"].reshape(1, D_FF).astype(f32),
        be2=p["ln2_b"].reshape(1, D_FF).astype(f32),
    )


# ------------------------------ Forward wrapper -------------------------------
@jax.jit
def transformer_encoder_layer(src, prepped):
    Sq, Bq, E = src.shape
    M = Sq * Bq
    x2 = src.reshape(M, E)

    vmem = pl.BlockSpec(memory_space=pltpu.MemorySpace.VMEM)
    args = (x2, prepped["wqkv"], prepped["bqkv"], prepped["wo"], prepped["bo"],
            prepped["g1"], prepped["be1"], prepped["w1"], prepped["b1"],
            prepped["w2"], prepped["b2"], prepped["g2"], prepped["be2"])

    flops = (2 * M * E * 3 * E                 # qkv projection
             + 2 * (2 * NHEAD * M * M * HEAD_DIM)   # scores + p@v
             + 2 * M * E * E                   # out_proj
             + 2 * M * E * D_FF                # linear1
             + 2 * M * D_FF * D_FF)            # linear2
    transcendentals = NHEAD * M * M + M * D_FF + 2 * M + NHEAD * M
    bytes_accessed = sum(a.size * a.dtype.itemsize for a in args) + M * D_FF * 4

    out = pl.pallas_call(
        functools.partial(fused_encoder_kernel, nhead=NHEAD, head_dim=HEAD_DIM,
                          batch=Bq, d_model=E),
        out_shape=jax.ShapeDtypeStruct((M, D_FF), jnp.float32),
        in_specs=[vmem] * len(args),
        out_specs=vmem,
        cost_estimate=pl.CostEstimate(flops=flops,
                                      transcendentals=transcendentals,
                                      bytes_accessed=bytes_accessed),
        compiler_params=pltpu.CompilerParams(vmem_limit_bytes=32 * 1024 * 1024),
    )(*args)
    return out.reshape(Sq, Bq, D_FF)


# ------------------------- Pure-JAX f32 reference -----------------------------
def reference(src, p):
    Sq, Bq, E = src.shape
    hi = jax.lax.Precision.HIGHEST
    x = src.reshape(Sq * Bq, E)
    qkv = jnp.dot(x, p["in_proj_w"].T, precision=hi) + p["in_proj_b"]
    q, k, v = jnp.split(qkv, 3, axis=-1)

    def to_heads(t):
        return (t.reshape(Sq, Bq, NHEAD, HEAD_DIM).transpose(1, 2, 0, 3)
                 .reshape(Bq * NHEAD, Sq, HEAD_DIM))

    qh, kh, vh = to_heads(q), to_heads(k), to_heads(v)
    s = jnp.einsum("bqd,bkd->bqk", qh * (HEAD_DIM ** -0.5), kh, precision=hi)
    pr = jax.nn.softmax(s, axis=-1)
    ao = jnp.einsum("bqk,bkd->bqd", pr, vh, precision=hi)
    ao = (ao.reshape(Bq, NHEAD, Sq, HEAD_DIM).transpose(2, 0, 1, 3)
            .reshape(Sq * Bq, E))
    src2 = jnp.dot(ao, p["out_proj_w"].T, precision=hi) + p["out_proj_b"]
    x1 = x + src2

    def ln(z, g, b):
        mu = z.mean(-1, keepdims=True)
        var = ((z - mu) ** 2).mean(-1, keepdims=True)
        return (z - mu) / jnp.sqrt(var + EPS) * g + b

    xn = ln(x1, p["ln1_g"], p["ln1_b"])
    h = jnp.dot(xn, p["w1"].T, precision=hi) + p["b1"]
    g = 0.5 * h * (1.0 + jax.lax.erf(h * 0.7071067811865476))
    h2 = jnp.dot(g, p["w2"].T, precision=hi) + p["b2"]
    y = ln(h + h2, p["ln2_g"], p["ln2_b"])
    return y.reshape(Sq, Bq, D_FF)


# ------------------------------------ Main -------------------------------------
if __name__ == "__main__":
    key = jax.random.PRNGKey(0)
    ks = jax.random.split(key, 14)
    f32 = jnp.float32
    params = {
        # nn.MultiheadAttention(d_model, nhead)
        "in_proj_w": 0.05 * jax.random.normal(ks[0], (3 * D_MODEL, D_MODEL), f32),
        "in_proj_b": 0.01 * jax.random.normal(ks[1], (3 * D_MODEL,), f32),
        "out_proj_w": 0.05 * jax.random.normal(ks[2], (D_MODEL, D_MODEL), f32),
        "out_proj_b": 0.01 * jax.random.normal(ks[3], (D_MODEL,), f32),
        # nn.Linear(d_model, dim_feedforward)
        "w1": 0.05 * jax.random.normal(ks[4], (D_FF, D_MODEL), f32),
        "b1": 0.01 * jax.random.normal(ks[5], (D_FF,), f32),
        # nn.Linear(dim_feedforward, dim_feedforward)
        "w2": 0.05 * jax.random.normal(ks[6], (D_FF, D_FF), f32),
        "b2": 0.01 * jax.random.normal(ks[7], (D_FF,), f32),
        # nn.LayerNorm(d_model)
        "ln1_g": 1.0 + 0.01 * jax.random.normal(ks[8], (D_MODEL,), f32),
        "ln1_b": 0.01 * jax.random.normal(ks[9], (D_MODEL,), f32),
        # nn.LayerNorm(dim_feedforward)
        "ln2_g": 1.0 + 0.01 * jax.random.normal(ks[10], (D_FF,), f32),
        "ln2_b": 0.01 * jax.random.normal(ks[11], (D_FF,), f32),
    }
    src = jax.random.normal(ks[12], (S, B, D_MODEL), dtype=f32)

    # TODO(synk): dropout (dropout/dropout1/dropout2) is identity (eval-mode).
    prepped = prepare_params(params)
    out = transformer_encoder_layer(src, prepped)
    out = jax.block_until_ready(out)

    ref = reference(src, params)
    max_err = float(jnp.max(jnp.abs(out - ref)))
    assert out.shape == (S, B, D_FF), out.shape
    # bf16 MXU operands (with f32 accumulation) bound the error; LN2 divides by
    # a per-row std of ~0.3, amplifying it into the low-1e-2 range.
    assert max_err < 4e-2, f"max abs err {max_err}"
    print("KERNEL_OK")
</pallas_src>

<mosaic_0001>
module attributes {stable_mosaic.version = 11 : i64} {
  func.func @fused_encoder_kernel(%arg0: memref<16x32xf32, #tpu.memory_space<vmem>>, %arg1: memref<32x96xbf16, #tpu.memory_space<vmem>>, %arg2: memref<1x96xf32, #tpu.memory_space<vmem>>, %arg3: memref<32x32xbf16, #tpu.memory_space<vmem>>, %arg4: memref<1x32xf32, #tpu.memory_space<vmem>>, %arg5: memref<1x32xf32, #tpu.memory_space<vmem>>, %arg6: memref<1x32xf32, #tpu.memory_space<vmem>>, %arg7: memref<32x64xbf16, #tpu.memory_space<vmem>>, %arg8: memref<1x64xf32, #tpu.memory_space<vmem>>, %arg9: memref<64x64xbf16, #tpu.memory_space<vmem>>, %arg10: memref<1x64xf32, #tpu.memory_space<vmem>>, %arg11: memref<1x64xf32, #tpu.memory_space<vmem>>, %arg12: memref<1x64xf32, #tpu.memory_space<vmem>>, %arg13: memref<16x64xf32, #tpu.memory_space<vmem>>) attributes {dimension_semantics = [], scalar_prefetch = 0 : i64, scratch_operands = 0 : i64, tpu.core_type = #tpu.core_type<tc>} {
    %c0 = arith.constant 0 : index
    %c0_0 = arith.constant 0 : index
    %0 = vector.load %arg0[%c0, %c0_0] : memref<16x32xf32, #tpu.memory_space<vmem>>, vector<16x32xf32>
    %1 = arith.truncf %0 : vector<16x32xf32> to vector<16x32xbf16>
    %c0_1 = arith.constant 0 : index
    %c0_2 = arith.constant 0 : index
    %2 = vector.load %arg1[%c0_1, %c0_2] : memref<32x96xbf16, #tpu.memory_space<vmem>>, vector<32x96xbf16>
    %cst = arith.constant dense<0.000000e+00> : vector<16x96xf32>
    %3 = tpu.matmul %1, %2, %cst {dimension_numbers = #tpu.dot_dimension_numbers<[1], [0], [0], [1], [0, 0, 1, 1], [], []>} : vector<16x32xbf16>, vector<32x96xbf16>, vector<16x96xf32> -> vector<16x96xf32>
    %c0_3 = arith.constant 0 : index
    %c0_4 = arith.constant 0 : index
    %4 = vector.load %arg2[%c0_3, %c0_4] : memref<1x96xf32, #tpu.memory_space<vmem>>, vector<1x96xf32>
    %5 = vector.broadcast %4 : vector<1x96xf32> to vector<16x96xf32>
    %6 = arith.addf %3, %5 : vector<16x96xf32>
    %7 = tpu.iota {dimensions = array<i32: 0>} : vector<16x16xi32>
    %c2_i32 = arith.constant 2 : i32
    %c0_i32 = arith.constant 0 : i32
    %8 = arith.cmpi eq, %c2_i32, %c0_i32 : i32
    %c1_i32 = arith.constant 1 : i32
    %9 = arith.select %8, %c1_i32, %c2_i32 : i32
    %10 = vector.broadcast %9 : i32 to vector<16x16xi32>
    %11 = arith.remsi %7, %10 : vector<16x16xi32>
    %c0_i32_5 = arith.constant 0 : i32
    %12 = vector.broadcast %c0_i32_5 : i32 to vector<16x16xi32>
    %13 = arith.cmpi ne, %11, %12 : vector<16x16xi32>
    %c0_i32_6 = arith.constant 0 : i32
    %14 = vector.broadcast %c0_i32_6 : i32 to vector<16x16xi32>
    %15 = arith.cmpi slt, %11, %14 : vector<16x16xi32>
    %c0_i32_7 = arith.constant 0 : i32
    %16 = arith.cmpi slt, %9, %c0_i32_7 : i32
    %17 = vector.broadcast %16 : i1 to vector<16x16xi1>
    %18 = vector.broadcast %17 : vector<16x16xi1> to vector<16x16xi1>
    %19 = arith.xori %15, %18 : vector<16x16xi1>
    %20 = arith.andi %19, %13 : vector<16x16xi1>
    %21 = vector.broadcast %9 : i32 to vector<16x16xi32>
    %22 = arith.addi %11, %21 : vector<16x16xi32>
    %23 = arith.select %20, %22, %11 : vector<16x16xi1>, vector<16x16xi32>
    %24 = tpu.iota {dimensions = array<i32: 1>} : vector<16x16xi32>
    %c2_i32_8 = arith.constant 2 : i32
    %c0_i32_9 = arith.constant 0 : i32
    %25 = arith.cmpi eq, %c2_i32_8, %c0_i32_9 : i32
    %c1_i32_10 = arith.constant 1 : i32
    %26 = arith.select %25, %c1_i32_10, %c2_i32_8 : i32
    %27 = vector.broadcast %26 : i32 to vector<16x16xi32>
    %28 = arith.remsi %24, %27 : vector<16x16xi32>
    %c0_i32_11 = arith.constant 0 : i32
    %29 = vector.broadcast %c0_i32_11 : i32 to vector<16x16xi32>
    %30 = arith.cmpi ne, %28, %29 : vector<16x16xi32>
    %c0_i32_12 = arith.constant 0 : i32
    %31 = vector.broadcast %c0_i32_12 : i32 to vector<16x16xi32>
    %32 = arith.cmpi slt, %28, %31 : vector<16x16xi32>
    %c0_i32_13 = arith.constant 0 : i32
    %33 = arith.cmpi slt, %26, %c0_i32_13 : i32
    %34 = vector.broadcast %33 : i1 to vector<16x16xi1>
    %35 = vector.broadcast %34 : vector<16x16xi1> to vector<16x16xi1>
    %36 = arith.xori %32, %35 : vector<16x16xi1>
    %37 = arith.andi %36, %30 : vector<16x16xi1>
    %38 = vector.broadcast %26 : i32 to vector<16x16xi32>
    %39 = arith.addi %28, %38 : vector<16x16xi32>
    %40 = arith.select %37, %39, %28 : vector<16x16xi1>, vector<16x16xi32>
    %41 = arith.cmpi eq, %23, %40 : vector<16x16xi32>
    %cst_14 = arith.constant 0.000000e+00 : f32
    %cst_15 = arith.constant -1.000000e+30 : f32
    %42 = vector.broadcast %cst_14 : f32 to vector<16x16xf32>
    %43 = vector.broadcast %cst_15 : f32 to vector<16x16xf32>
    %44 = arith.select %41, %42, %43 : vector<16x16xi1>, vector<16x16xf32>
    %45 = arith.truncf %6 : vector<16x96xf32> to vector<16x96xbf16>
    %46 = vector.extract_strided_slice %45 {offsets = [0, 0], sizes = [16, 8], strides = [1, 1]} : vector<16x96xbf16> to vector<16x8xbf16>
    %47 = vector.extract_strided_slice %45 {offsets = [0, 32], sizes = [16, 8], strides = [1, 1]} : vector<16x96xbf16> to vector<16x8xbf16>
    %48 = vector.extract_strided_slice %45 {offsets = [0, 64], sizes = [16, 8], strides = [1, 1]} : vector<16x96xbf16> to vector<16x8xbf16>
    %cst_16 = arith.constant dense<0.000000e+00> : vector<16x16xf32>
    %49 = tpu.matmul %46, %47, %cst_16 {dimension_numbers = #tpu.dot_dimension_numbers<[1], [1], [0], [0], [0, 0, 1, 0], [], []>} : vector<16x8xbf16>, vector<16x8xbf16>, vector<16x16xf32> -> vector<16x16xf32>
    %50 = arith.addf %49, %44 : vector<16x16xf32>
    %cst_17 = arith.constant dense<0xFF800000> : vector<16xf32>
    %51 = vector.multi_reduction <maximumf>, %50, %cst_17 [1] : vector<16x16xf32> to vector<16xf32>
    %52 = vector.shape_cast %51 : vector<16xf32> to vector<16x1xf32>
    %53 = vector.broadcast %52 : vector<16x1xf32> to vector<16x16xf32>
    %54 = arith.subf %50, %53 : vector<16x16xf32>
    %55 = math.exp %54 : vector<16x16xf32>
    %cst_18 = arith.constant dense<0.000000e+00> : vector<16xf32>
    %56 = vector.multi_reduction <add>, %55, %cst_18 [1] : vector<16x16xf32> to vector<16xf32>
    %57 = vector.shape_cast %56 : vector<16xf32> to vector<16x1xf32>
    %58 = tpu.reciprocal %57 {approx = true} : vector<16x1xf32> -> vector<16x1xf32>
    %59 = vector.broadcast %58 : vector<16x1xf32> to vector<16x16xf32>
    %60 = arith.mulf %55, %59 : vector<16x16xf32>
    %61 = arith.truncf %60 : vector<16x16xf32> to vector<16x16xbf16>
    %cst_19 = arith.constant dense<0.000000e+00> : vector<16x8xf32>
    %62 = tpu.matmul %61, %48, %cst_19 {dimension_numbers = #tpu.dot_dimension_numbers<[1], [0], [0], [1], [0, 0, 1, 1], [], []>} : vector<16x16xbf16>, vector<16x8xbf16>, vector<16x8xf32> -> vector<16x8xf32>
    %63 = vector.extract_strided_slice %45 {offsets = [0, 8], sizes = [16, 8], strides = [1, 1]} : vector<16x96xbf16> to vector<16x8xbf16>
    %64 = vector.extract_strided_slice %45 {offsets = [0, 40], sizes = [16, 8], strides = [1, 1]} : vector<16x96xbf16> to vector<16x8xbf16>
    %65 = vector.extract_strided_slice %45 {offsets = [0, 72], sizes = [16, 8], strides = [1, 1]} : vector<16x96xbf16> to vector<16x8xbf16>
    %cst_20 = arith.constant dense<0.000000e+00> : vector<16x16xf32>
    %66 = tpu.matmul %63, %64, %cst_20 {dimension_numbers = #tpu.dot_dimension_numbers<[1], [1], [0], [0], [0, 0, 1, 0], [], []>} : vector<16x8xbf16>, vector<16x8xbf16>, vector<16x16xf32> -> vector<16x16xf32>
    %67 = arith.addf %66, %44 : vector<16x16xf32>
    %cst_21 = arith.constant dense<0xFF800000> : vector<16xf32>
    %68 = vector.multi_reduction <maximumf>, %67, %cst_21 [1] : vector<16x16xf32> to vector<16xf32>
    %69 = vector.shape_cast %68 : vector<16xf32> to vector<16x1xf32>
    %70 = vector.broadcast %69 : vector<16x1xf32> to vector<16x16xf32>
    %71 = arith.subf %67, %70 : vector<16x16xf32>
    %72 = math.exp %71 : vector<16x16xf32>
    %cst_22 = arith.constant dense<0.000000e+00> : vector<16xf32>
    %73 = vector.multi_reduction <add>, %72, %cst_22 [1] : vector<16x16xf32> to vector<16xf32>
    %74 = vector.shape_cast %73 : vector<16xf32> to vector<16x1xf32>
    %75 = tpu.reciprocal %74 {approx = true} : vector<16x1xf32> -> vector<16x1xf32>
    %76 = vector.broadcast %75 : vector<16x1xf32> to vector<16x16xf32>
    %77 = arith.mulf %72, %76 : vector<16x16xf32>
    %78 = arith.truncf %77 : vector<16x16xf32> to vector<16x16xbf16>
    %cst_23 = arith.constant dense<0.000000e+00> : vector<16x8xf32>
    %79 = tpu.matmul %78, %65, %cst_23 {dimension_numbers = #tpu.dot_dimension_numbers<[1], [0], [0], [1], [0, 0, 1, 1], [], []>} : vector<16x16xbf16>, vector<16x8xbf16>, vector<16x8xf32> -> vector<16x8xf32>
    %80 = vector.extract_strided_slice %45 {offsets = [0, 16], sizes = [16, 8], strides = [1, 1]} : vector<16x96xbf16> to vector<16x8xbf16>
    %81 = vector.extract_strided_slice %45 {offsets = [0, 48], sizes = [16, 8], strides = [1, 1]} : vector<16x96xbf16> to vector<16x8xbf16>
    %82 = vector.extract_strided_slice %45 {offsets = [0, 80], sizes = [16, 8], strides = [1, 1]} : vector<16x96xbf16> to vector<16x8xbf16>
    %cst_24 = arith.constant dense<0.000000e+00> : vector<16x16xf32>
    %83 = tpu.matmul %80, %81, %cst_24 {dimension_numbers = #tpu.dot_dimension_numbers<[1], [1], [0], [0], [0, 0, 1, 0], [], []>} : vector<16x8xbf16>, vector<16x8xbf16>, vector<16x16xf32> -> vector<16x16xf32>
    %84 = arith.addf %83, %44 : vector<16x16xf32>
    %cst_25 = arith.constant dense<0xFF800000> : vector<16xf32>
    %85 = vector.multi_reduction <maximumf>, %84, %cst_25 [1] : vector<16x16xf32> to vector<16xf32>
    %86 = vector.shape_cast %85 : vector<16xf32> to vector<16x1xf32>
    %87 = vector.broadcast %86 : vector<16x1xf32> to vector<16x16xf32>
    %88 = arith.subf %84, %87 : vector<16x16xf32>
    %89 = math.exp %88 : vector<16x16xf32>
    %cst_26 = arith.constant dense<0.000000e+00> : vector<16xf32>
    %90 = vector.multi_reduction <add>, %89, %cst_26 [1] : vector<16x16xf32> to vector<16xf32>
    %91 = vector.shape_cast %90 : vector<16xf32> to vector<16x1xf32>
    %92 = tpu.reciprocal %91 {approx = true} : vector<16x1xf32> -> vector<16x1xf32>
    %93 = vector.broadcast %92 : vector<16x1xf32> to vector<16x16xf32>
    %94 = arith.mulf %89, %93 : vector<16x16xf32>
    %95 = arith.truncf %94 : vector<16x16xf32> to vector<16x16xbf16>
    %cst_27 = arith.constant dense<0.000000e+00> : vector<16x8xf32>
    %96 = tpu.matmul %95, %82, %cst_27 {dimension_numbers = #tpu.dot_dimension_numbers<[1], [0], [0], [1], [0, 0, 1, 1], [], []>} : vector<16x16xbf16>, vector<16x8xbf16>, vector<16x8xf32> -> vector<16x8xf32>
    %97 = vector.extract_strided_slice %45 {offsets = [0, 24], sizes = [16, 8], strides = [1, 1]} : vector<16x96xbf16> to vector<16x8xbf16>
    %98 = vector.extract_strided_slice %45 {offsets = [0, 56], sizes = [16, 8], strides = [1, 1]} : vector<16x96xbf16> to vector<16x8xbf16>
    %99 = vector.extract_strided_slice %45 {offsets = [0, 88], sizes = [16, 8], strides = [1, 1]} : vector<16x96xbf16> to vector<16x8xbf16>
    %cst_28 = arith.constant dense<0.000000e+00> : vector<16x16xf32>
    %100 = tpu.matmul %97, %98, %cst_28 {dimension_numbers = #tpu.dot_dimension_numbers<[1], [1], [0], [0], [0, 0, 1, 0], [], []>} : vector<16x8xbf16>, vector<16x8xbf16>, vector<16x16xf32> -> vector<16x16xf32>
    %101 = arith.addf %100, %44 : vector<16x16xf32>
    %cst_29 = arith.constant dense<0xFF800000> : vector<16xf32>
    %102 = vector.multi_reduction <maximumf>, %101, %cst_29 [1] : vector<16x16xf32> to vector<16xf32>
    %103 = vector.shape_cast %102 : vector<16xf32> to vector<16x1xf32>
    %104 = vector.broadcast %103 : vector<16x1xf32> to vector<16x16xf32>
    %105 = arith.subf %101, %104 : vector<16x16xf32>
    %106 = math.exp %105 : vector<16x16xf32>
    %cst_30 = arith.constant dense<0.000000e+00> : vector<16xf32>
    %107 = vector.multi_reduction <add>, %106, %cst_30 [1] : vector<16x16xf32> to vector<16xf32>
    %108 = vector.shape_cast %107 : vector<16xf32> to vector<16x1xf32>
    %109 = tpu.reciprocal %108 {approx = true} : vector<16x1xf32> -> vector<16x1xf32>
    %110 = vector.broadcast %109 : vector<16x1xf32> to vector<16x16xf32>
    %111 = arith.mulf %106, %110 : vector<16x16xf32>
    %112 = arith.truncf %111 : vector<16x16xf32> to vector<16x16xbf16>
    %cst_31 = arith.constant dense<0.000000e+00> : vector<16x8xf32>
    %113 = tpu.matmul %112, %99, %cst_31 {dimension_numbers = #tpu.dot_dimension_numbers<[1], [0], [0], [1], [0, 0, 1, 1], [], []>} : vector<16x16xbf16>, vector<16x8xbf16>, vector<16x8xf32> -> vector<16x8xf32>
    %114 = tpu.concatenate %62, %79, %96, %113 in 1 : vector<16x8xf32>, vector<16x8xf32>, vector<16x8xf32>, vector<16x8xf32> -> vector<16x32xf32>
    %115 = arith.truncf %114 : vector<16x32xf32> to vector<16x32xbf16>
    %c0_32 = arith.constant 0 : index
    %c0_33 = arith.constant 0 : index
    %116 = vector.load %arg3[%c0_32, %c0_33] : memref<32x32xbf16, #tpu.memory_space<vmem>>, vector<32x32xbf16>
    %cst_34 = arith.constant dense<0.000000e+00> : vector<16x32xf32>
    %117 = tpu.matmul %115, %116, %cst_34 {dimension_numbers = #tpu.dot_dimension_numbers<[1], [0], [0], [1], [0, 0, 1, 1], [], []>} : vector<16x32xbf16>, vector<32x32xbf16>, vector<16x32xf32> -> vector<16x32xf32>
    %c0_35 = arith.constant 0 : index
    %c0_36 = arith.constant 0 : index
    %118 = vector.load %arg4[%c0_35, %c0_36] : memref<1x32xf32, #tpu.memory_space<vmem>>, vector<1x32xf32>
    %119 = vector.broadcast %118 : vector<1x32xf32> to vector<16x32xf32>
    %120 = arith.addf %117, %119 : vector<16x32xf32>
    %121 = arith.addf %0, %120 : vector<16x32xf32>
    %c0_37 = arith.constant 0 : index
    %c0_38 = arith.constant 0 : index
    %122 = vector.load %arg5[%c0_37, %c0_38] : memref<1x32xf32, #tpu.memory_space<vmem>>, vector<1x32xf32>
    %c0_39 = arith.constant 0 : index
    %c0_40 = arith.constant 0 : index
    %123 = vector.load %arg6[%c0_39, %c0_40] : memref<1x32xf32, #tpu.memory_space<vmem>>, vector<1x32xf32>
    %cst_41 = arith.constant dense<0.000000e+00> : vector<16xf32>
    %124 = vector.multi_reduction <add>, %121, %cst_41 [1] : vector<16x32xf32> to vector<16xf32>
    %125 = vector.shape_cast %124 : vector<16xf32> to vector<16x1xf32>
    %cst_42 = arith.constant 3.200000e+01 : f32
    %126 = vector.broadcast %cst_42 : f32 to vector<16x1xf32>
    %127 = arith.divf %125, %126 : vector<16x1xf32>
    %128 = vector.broadcast %127 : vector<16x1xf32> to vector<16x32xf32>
    %129 = arith.subf %121, %128 : vector<16x32xf32>
    %130 = arith.mulf %129, %129 : vector<16x32xf32>
    %cst_43 = arith.constant dense<0.000000e+00> : vector<16xf32>
    %131 = vector.multi_reduction <add>, %130, %cst_43 [1] : vector<16x32xf32> to vector<16xf32>
    %132 = vector.shape_cast %131 : vector<16xf32> to vector<16x1xf32>
    %cst_44 = arith.constant 3.200000e+01 : f32
    %133 = vector.broadcast %cst_44 : f32 to vector<16x1xf32>
    %134 = arith.divf %132, %133 : vector<16x1xf32>
    %135 = vector.broadcast %127 : vector<16x1xf32> to vector<16x32xf32>
    %136 = arith.subf %121, %135 : vector<16x32xf32>
    %cst_45 = arith.constant 9.99999974E-6 : f32
    %137 = vector.broadcast %cst_45 : f32 to vector<16x1xf32>
    %138 = arith.addf %134, %137 : vector<16x1xf32>
    %139 = math.rsqrt %138 : vector<16x1xf32>
    %140 = vector.broadcast %139 : vector<16x1xf32> to vector<16x32xf32>
    %141 = arith.mulf %136, %140 : vector<16x32xf32>
    %142 = vector.broadcast %122 : vector<1x32xf32> to vector<16x32xf32>
    %143 = arith.mulf %141, %142 : vector<16x32xf32>
    %144 = vector.broadcast %123 : vector<1x32xf32> to vector<16x32xf32>
    %145 = arith.addf %143, %144 : vector<16x32xf32>
    %146 = arith.truncf %145 : vector<16x32xf32> to vector<16x32xbf16>
    %c0_46 = arith.constant 0 : index
    %c0_47 = arith.constant 0 : index
    %147 = vector.load %arg7[%c0_46, %c0_47] : memref<32x64xbf16, #tpu.memory_space<vmem>>, vector<32x64xbf16>
    %cst_48 = arith.constant dense<0.000000e+00> : vector<16x64xf32>
    %148 = tpu.matmul %146, %147, %cst_48 {dimension_numbers = #tpu.dot_dimension_numbers<[1], [0], [0], [1], [0, 0, 1, 1], [], []>} : vector<16x32xbf16>, vector<32x64xbf16>, vector<16x64xf32> -> vector<16x64xf32>
    %c0_49 = arith.constant 0 : index
    %c0_50 = arith.constant 0 : index
    %149 = vector.load %arg8[%c0_49, %c0_50] : memref<1x64xf32, #tpu.memory_space<vmem>>, vector<1x64xf32>
    %150 = vector.broadcast %149 : vector<1x64xf32> to vector<16x64xf32>
    %151 = arith.addf %148, %150 : vector<16x64xf32>
    %cst_51 = arith.constant 5.000000e-01 : f32
    %152 = vector.broadcast %cst_51 : f32 to vector<16x64xf32>
    %153 = arith.mulf %152, %151 : vector<16x64xf32>
    %cst_52 = arith.constant 0.707106769 : f32
    %154 = vector.broadcast %cst_52 : f32 to vector<16x64xf32>
    %155 = arith.mulf %151, %154 : vector<16x64xf32>
    %156 = math.erf %155 : vector<16x64xf32>
    %cst_53 = arith.constant 1.000000e+00 : f32
    %157 = vector.broadcast %cst_53 : f32 to vector<16x64xf32>
    %158 = arith.addf %157, %156 : vector<16x64xf32>
    %159 = arith.mulf %153, %158 : vector<16x64xf32>
    %160 = arith.truncf %159 : vector<16x64xf32> to vector<16x64xbf16>
    %c0_54 = arith.constant 0 : index
    %c0_55 = arith.constant 0 : index
    %161 = vector.load %arg9[%c0_54, %c0_55] : memref<64x64xbf16, #tpu.memory_space<vmem>>, vector<64x64xbf16>
    %cst_56 = arith.constant dense<0.000000e+00> : vector<16x64xf32>
    %162 = tpu.matmul %160, %161, %cst_56 {dimension_numbers = #tpu.dot_dimension_numbers<[1], [0], [0], [1], [0, 0, 1, 1], [], []>} : vector<16x64xbf16>, vector<64x64xbf16>, vector<16x64xf32> -> vector<16x64xf32>
    %c0_57 = arith.constant 0 : index
    %c0_58 = arith.constant 0 : index
    %163 = vector.load %arg10[%c0_57, %c0_58] : memref<1x64xf32, #tpu.memory_space<vmem>>, vector<1x64xf32>
    %164 = vector.broadcast %163 : vector<1x64xf32> to vector<16x64xf32>
    %165 = arith.addf %162, %164 : vector<16x64xf32>
    %166 = arith.addf %151, %165 : vector<16x64xf32>
    %c0_59 = arith.constant 0 : index
    %c0_60 = arith.constant 0 : index
    %167 = vector.load %arg11[%c0_59, %c0_60] : memref<1x64xf32, #tpu.memory_space<vmem>>, vector<1x64xf32>
    %c0_61 = arith.constant 0 : index
    %c0_62 = arith.constant 0 : index
    %168 = vector.load %arg12[%c0_61, %c0_62] : memref<1x64xf32, #tpu.memory_space<vmem>>, vector<1x64xf32>
    %cst_63 = arith.constant dense<0.000000e+00> : vector<16xf32>
    %169 = vector.multi_reduction <add>, %166, %cst_63 [1] : vector<16x64xf32> to vector<16xf32>
    %170 = vector.shape_cast %169 : vector<16xf32> to vector<16x1xf32>
    %cst_64 = arith.constant 6.400000e+01 : f32
    %171 = vector.broadcast %cst_64 : f32 to vector<16x1xf32>
    %172 = arith.divf %170, %171 : vector<16x1xf32>
    %173 = vector.broadcast %172 : vector<16x1xf32> to vector<16x64xf32>
    %174 = arith.subf %166, %173 : vector<16x64xf32>
    %175 = arith.mulf %174, %174 : vector<16x64xf32>
    %cst_65 = arith.constant dense<0.000000e+00> : vector<16xf32>
    %176 = vector.multi_reduction <add>, %175, %cst_65 [1] : vector<16x64xf32> to vector<16xf32>
    %177 = vector.shape_cast %176 : vector<16xf32> to vector<16x1xf32>
    %cst_66 = arith.constant 6.400000e+01 : f32
    %178 = vector.broadcast %cst_66 : f32 to vector<16x1xf32>
    %179 = arith.divf %177, %178 : vector<16x1xf32>
    %180 = vector.broadcast %172 : vector<16x1xf32> to vector<16x64xf32>
    %181 = arith.subf %166, %180 : vector<16x64xf32>
    %cst_67 = arith.constant 9.99999974E-6 : f32
    %182 = vector.broadcast %cst_67 : f32 to vector<16x1xf32>
    %183 = arith.addf %179, %182 : vector<16x1xf32>
    %184 = math.rsqrt %183 : vector<16x1xf32>
    %185 = vector.broadcast %184 : vector<16x1xf32> to vector<16x64xf32>
    %186 = arith.mulf %181, %185 : vector<16x64xf32>
    %187 = vector.broadcast %167 : vector<1x64xf32> to vector<16x64xf32>
    %188 = arith.mulf %186, %187 : vector<16x64xf32>
    %189 = vector.broadcast %168 : vector<1x64xf32> to vector<16x64xf32>
    %190 = arith.addf %188, %189 : vector<16x64xf32>
    %c0_68 = arith.constant 0 : index
    %c0_69 = arith.constant 0 : index
    %191 = vector.load %arg13[%c0_68, %c0_69] : memref<16x64xf32, #tpu.memory_space<vmem>>, vector<16x64xf32>
    tpu.vector_store %arg13[%c0_68, %c0_69], %190 {strides = array<i32>} : memref<16x64xf32, #tpu.memory_space<vmem>>, vector<16x64xf32>,
    return
  }
}

</mosaic_0001>

<bundles_post_ra>
// kernel: transformer_encoder_layer.1
= control target key start
LH: loop header
LB: loop body
LE: loop exit
PB: predicated region body
PF: predicated region fallthrough
CT: control target
= control target key end

     0   :  { %18 = vsyncpa [#allocation3], 0  ;;  %s1621_s0 = inlined_call_operand.hbm [shape: f32[16,32], index: 0, kind: input, shape index: {}]   ;;  %s1622_s1 = inlined_call_operand.hbm [shape: bf16[32,96], index: 1, kind: input, shape index: {}]   ;;  %s1623_s2 = inlined_call_operand.vmem [shape: f32[1,96], index: 2, kind: input, shape index: {}]   ;;  %s1624_s3 = inlined_call_operand.hbm [shape: bf16[32,32], index: 3, kind: input, shape index: {}]   ;;  %s1625_s4 = inlined_call_operand.vmem [shape: f32[1,32], index: 4, kind: input, shape index: {}]   ;;  %s1626_s5 = inlined_call_operand.vmem [shape: f32[1,32], index: 5, kind: input, shape index: {}]   ;;  %s1627_s6 = inlined_call_operand.hbm [shape: f32[1,32], index: 6, kind: input, shape index: {}]   ;;  %s1628_s7 = inlined_call_operand.hbm [shape: bf16[32,64], index: 7, kind: input, shape index: {}]   ;;  %s1629_s8 = inlined_call_operand.hbm [shape: f32[1,64], index: 8, kind: input, shape index: {}]   ;;  %s1630_s9 = inlined_call_operand.hbm [shape: bf16[64,64], index: 9, kind: input, shape index: {}]   ;;  %s1631_s10 = inlined_call_operand.hbm [shape: f32[1,64], index: 10, kind: input, shape index: {}]   ;;  %s1632_s11 = inlined_call_operand.vmem [shape: f32[1,64], index: 11, kind: input, shape index: {}]   ;;  %s1633_s12 = inlined_call_operand.hbm [shape: f32[1,64], index: 12, kind: input, shape index: {}]   ;;  %s1634_s13 = inlined_call_operand.hbm [shape: f32[16,64], index: 13, kind: output, shape index: {}]  }
   0x1   :  { %19 = vsyncpa [#allocation6], 0 }
   0x2   :  { %20 = vsyncpa [#allocation9], 0 }
   0x3   :  { %21 = vsyncpa [#allocation12], 0 }
   0x4   :  { %22 = vsyncpa [#allocation15], 0  ;;  %s41_s27 = sshll.u32 %s1622_s1, 4  ;;  %s42_s27 = int_to_ptr.hbm [resolvable:$true] %s41_s27 }
   0x5   :  { %23 = vsyncpa [#allocation4], 0  ;;  %s1360_s28 = smov [#allocation5]   ;;  %s74_s15 = sshll.u32 %s1627_s6, 4  ;;  %s75_s15 = int_to_ptr.hbm [resolvable:$true] %s74_s15 }
   0x6   :  { %s43_s29 = sshll.u32 %s1360_s28, 4  ;;  %s1361_s16 = smov 64   ;;  %s44_s29 = int_to_ptr.vmem [resolvable:$true] %s43_s29 }
   0x7   :  { %s1362_s17 = smov 4   ;;  %s1363_s18 = smov [#allocation8]  }
   0x8   :  { %49 = dma.hbm_to_vmem [thread:$0]  %s42_s27, 256, %s44_s29, [#allocation6], %s1361_s16, %s1361_s16, %s1362_s17  }
   0x9   :  { %s76_s19 = sshll.u32 %s1363_s18, 4  ;;  %s98_s21 = sshll.u32 %s1629_s8, 4  ;;  %s77_s19 = int_to_ptr.vmem [resolvable:$true] %s76_s19  ;;  %s99_s21 = int_to_ptr.hbm [resolvable:$true] %s98_s21 }
   0xa   :  { %79 = dma.hbm_to_vmem [thread:$0]  %s75_s15, 16, %s77_s19, [#allocation9]  }
   0xb   :  { %s122_s6 = sshll.u32 %s1631_s10, 4  ;;  %s1364_s24 = smov [#allocation11]   ;;  %s123_s6 = int_to_ptr.hbm [resolvable:$true] %s122_s6 }
   0xc   :  { %s100_s25 = sshll.u32 %s1364_s24, 4  ;;  %s1365_s26 = smov [#allocation14]   ;;  %s101_s25 = int_to_ptr.vmem [resolvable:$true] %s100_s25 }
   0xd   :  { %103 = dma.hbm_to_vmem [thread:$0]  %s99_s21, 16, %s101_s25, [#allocation12]  }
   0xe   :  { %s124_s27 = sshll.u32 %s1365_s26, 4  ;;  %s28_s30 = sshll.u32 %s1621_s0, 4  ;;  %s125_s27 = int_to_ptr.vmem [resolvable:$true] %s124_s27  ;;  %s29_s30 = int_to_ptr.hbm [resolvable:$true] %s28_s30 }
   0xf   :  { %127 = dma.hbm_to_vmem [thread:$0]  %s123_s6, 16, %s125_s27, [#allocation15]  }
  0x10   :  { %s1366_s8 = smov [#allocation2]   ;;  %s56_s10 = sshll.u32 %s1624_s3, 4  ;;  %s57_s10 = int_to_ptr.hbm [resolvable:$true] %s56_s10 }
  0x11   :  { %s30_s14 = sshll.u32 %s1366_s8, 4  ;;  %s1367_s19 = smov 128   ;;  %s31_s14 = int_to_ptr.vmem [resolvable:$true] %s30_s14 }
  0x12   :  { %s1368_s20 = smov 8   ;;  %s1369_s1 = smov [#allocation7]  }
  0x13   :  { %36 = dma.hbm_to_vmem [thread:$0]  %s29_s30, 256, %s31_s14, [#allocation3], %s1367_s19, %s1367_s19, %s1368_s20  }
  0x14   :  { %s58_s21 = sshll.u32 %s1369_s1, 4  ;;  %s84_s23 = sshll.u32 %s1628_s7, 4  ;;  %s59_s21 = int_to_ptr.vmem [resolvable:$true] %s58_s21  ;;  %s85_s23 = int_to_ptr.hbm [resolvable:$true] %s84_s23 }
  0x15   :  { %64 = dma.hbm_to_vmem [thread:$0]  %s57_s10, 256, %s59_s21, [#allocation6], %s1361_s16, %s1361_s16, %s1362_s17  }
  0x16   :  { %s108_s24 = sshll.u32 %s1630_s9, 4  ;;  %s1370_s25 = smov [#allocation10]   ;;  %s109_s24 = int_to_ptr.hbm [resolvable:$true] %s108_s24 }
  0x17   :  { %s86_s26 = sshll.u32 %s1370_s25, 4  ;;  %s1371_s27 = smov [#allocation13]   ;;  %s87_s26 = int_to_ptr.vmem [resolvable:$true] %s86_s26 }
  0x18   :  { %92 = dma.hbm_to_vmem [thread:$0]  %s85_s23, 256, %s87_s26, [#allocation9], %s1361_s16, %s1361_s16, %s1362_s17  }
  0x19   :  { %s110_s7 = sshll.u32 %s1371_s27, 4  ;;  %s135_s30 = sshll.u32 %s1633_s12, 4  ;;  %s111_s7 = int_to_ptr.vmem [resolvable:$true] %s110_s7  ;;  %s136_s30 = int_to_ptr.hbm [resolvable:$true] %s135_s30 }
  0x1a   :  { %116 = dma.hbm_to_vmem [thread:$0]  %s109_s24, 512, %s111_s7, [#allocation12], %s1361_s16, %s1361_s16, %s1362_s17  }
  0x1b   :  { %s1372_s9 = smov [#allocation16]  }
  0x1c   :  { %s137_s8 = sshll.u32 %s1372_s9, 4  ;;  %s138_s8 = int_to_ptr.vmem [resolvable:$true] %s137_s8 }
  0x1d   :  { %140 = dma.hbm_to_vmem [thread:$0]  %s136_s30, 16, %s138_s8, [#allocation15]  }
  0x1e   :  { %1348 = dma.done.wait [#allocation3], 256  }
  0x1f   :  { %1349 = vsyncadd [#allocation3], 4294967040 }
  0x20   :  { %1350 = dma.done.wait [#allocation6], 512  }
  0x21   :  { %1351 = vsyncadd [#allocation6], 4294966784 }
  0x22   :  { %1352 = dma.done.wait [#allocation9], 272  }
  0x23   :  { %1353 = vsyncadd [#allocation9], 4294967024 }
  0x24   :  { %1354 = dma.done.wait [#allocation12], 528  }
  0x25   :  { %1355 = vsyncadd [#allocation12], 4294966768 }
  0x26   :  { %1356 = dma.done.wait [#allocation15], 32  }
  0x27   :  { %1357 = vsyncadd [#allocation15], 4294967264  ;;  %v999_v0 = vld [vmem:[#allocation5 + $0x8] sm:$0xff]  ;;  %v998_v1 = vld [vmem:[#allocation5] sm:$0xff]  ;;  %vm201_vm0 = vcmask 261120   ;;  %s1373_s14 = smov 104   ;;  %v219_v26 = vlaneseq }
  0x28   :  { %v1501_v2 = vld [vmem:[#allocation2] sm:$0xff]  ;;  %v1503_v3 = vld [vmem:[#allocation2 + $0x8] sm:$0xff]  ;;  %211 = vmatpush.bf16.msra.mxu0 %v999_v0  ;;  %s1374_s15 = smov 120   ;;  %s1375_s18 = smov 96   ;;  %vm273_vm1 = vcmask 64512   ;;  %vm294_vm3 = vcmask 130048  }
  0x29   :  { %v180_v4 = vpack.c.bf16 %v1503_v3, %v1501_v2  ;;  %v1052_v6 = vld [vmem:[%s1623_s2] ss:$0 sm:$0xff]  ;;  %s1376_s10 = smov 80   ;;  %s1377_s2 = smov 72   ;;  %v220_v27 = vshrl.u32 %v219_v26, 7  ;;  %v247_v28 = vand.u32 127, %v219_v26 }
  0x2a   :  { %s1378_s1 = smov 88   ;;  %s1379_s21 = smov 112   ;;  %v1380_v32 = vmov -1e+30   ;;  %vm567_vm5 = vcmask 195584  }
  0x2b   :  { %v226_v29 = vand.u32 1, %v220_v27  ;;  %v252_v30 = vand.u32 1, %v247_v28  ;;  %v221_v31 = vadd.s32 8, %v220_v27  ;;  %s1381_s0 = smov 56   ;;  %s1383_s22 = smov 48  }
  0x2c   :  { %212 = vmatpush.bf16.msra.mxu0 %v998_v1  ;;  %s1384_s23 = smov 24   ;;  %s1385_s3 = smov 16  }
  0x2d   :  { %vm260_vm2 = vcmp.eq.s32.totalorder %v226_v29, %v252_v30  ;;  %v233_v34 = vand.u32 1, %v221_v31  ;;  %s1388_s27 = smov [#allocation17]   ;;  %s927_s29 = sshll.u32 %s1634_s13, 4  ;;  %s928_s29 = int_to_ptr.hbm [resolvable:$true] %s927_s29 }
  0x2e   :  { %v262_v33 = vsel %vm260_vm2, 0.0, %v1380_v32  ;;  %s925_s7 = sshll.u32 %s1388_s27, 4  ;;  %s926_s7 = int_to_ptr.vmem [resolvable:$true] %s925_s7 }
  0x2f   :  { %952 = vmatmul.msk.bf16.vlgmr.msra.gmra.mxu0 %vm201_vm0, %v180_v4  ;;  %vm261_vm4 = vcmp.eq.s32.totalorder %v233_v34, %v252_v30 }
  0x30   :  { %v263_v38 = vsel %vm261_vm4, 0.0, %v1380_v32 }
  0xac   :  { %v214_v5 = vpop.f32.mrf.mxu0 }
  0xad   :  { %v215_v7 = vadd.f32 %v1052_v6, %v214_v5 }
  0xaf   :  { %v264_v9 = vpack.c.bf16 %v215_v7, %v215_v7 }
  0xb1   :  { %v268_v12 = vunpack.c.l.b16 %v264_v9 }
  0xb4   :  { %v216_v8 = vpop.f32.mrf.mxu0 }
  0xb5   :  { %v217_v10 = vadd.f32 %v1052_v6, %v216_v8 }
  0xb7   :  { %v265_v11 = vpack.c.bf16 %v217_v10, %v217_v10 }
  0xb9   :  { %v269_v13 = vunpack.c.l.b16 %v265_v11 }
  0xbb   :  { %v1511_v14 = vpack.c.b16 %v269_v13, %v268_v12 }
  0xbd   :  { %472 = vrot.lane.b32.xlu2 %v1511_v14, %s1373_s14  ;;  %338 = vrot.lane.b32.xlu1 %v1511_v14, %s1374_s15 }
  0xbe   :  { %271 = vrot.lane.b32.xlu0 %v1511_v14, %s1375_s18 }
  0xc5   :  { %407 = vrot.lane.b32.xlu2 %v1511_v14, %s1376_s10  ;;  %474 = vrot.lane.b32.xlu1 %v1511_v14, %s1377_s2 }
  0xc6   :  { %340 = vrot.lane.b32.xlu0 %v1511_v14, %s1378_s1 }
  0xce   :  { %405 = vrot.lane.b32.xlu0 %v1511_v14, %s1379_s21 }
 0x117   :  { %v473_v15 = vpop.permute.xlu2 %472 }
 0x11f   :  { %v408_v16 = vpop.permute.xlu2 %407 }
 0x120   :  { %v413_v17 = vsel %vm273_vm1, %v408_v16, 0 }
 0x121   :  { %422 = vmatpush.bf16.xpose.msrb.mxu0 %v413_v17 }
 0x12f   :  { %v339_v18 = vpop.permute.xlu1 %338 }
 0x130   :  { %v272_v19 = vpop.permute.xlu0 %271 }
 0x131   :  { %v278_v20 = vsel %vm273_vm1, %v272_v19, 0 }
 0x132   :  { %287 = vmatpush.bf16.xpose.msra.mxu1 %v278_v20 }
 0x137   :  { %v475_v21 = vpop.permute.xlu1 %474 }
 0x138   :  { %v341_v22 = vpop.permute.xlu0 %340  ;;  %v480_v23 = vsel %vm273_vm1, %v475_v21, 0 }
 0x139   :  { %953 = vmatmul.msk.bf16.vlgmr.msra.gmra.mxu1 %vm273_vm1, %v1511_v14  ;;  %v346_v24 = vsel %vm273_vm1, %v341_v22, 0 }
 0x13a   :  { %355 = vmatpush.bf16.xpose.msra.mxu3 %v346_v24 }
 0x140   :  { %v406_v25 = vpop.permute.xlu0 %405 }
 0x141   :  { %955 = vmatmul.msk.bf16.vlgmr.msra.gmra.mxu3 %vm273_vm1, %v339_v18  ;;  %957 = vmatmul.msk.bf16.vlgmr.msrb.gmra.mxu0 %vm273_vm1, %v406_v25 }
 0x142   :  { %489 = vmatpush.bf16.xpose.msrb.mxu3 %v480_v23 }
 0x151   :  { %959 = vmatmul.msk.bf16.vlgmr.msrb.gmra.mxu3 %vm273_vm1, %v473_v15 }
 0x1b6   :  { %v289_v35 = vpop.f32.mrf.mxu1 }
 0x1b7   :  { %v290_v36 = vadd.f32 %v289_v35, %v262_v33 }
 0x1b9   :  { %v295_v37 = vsel %vm294_vm3, %v290_v36, -inf }
 0x1ba   :  { %296 = vmax.xlane.f32.xlu1 %v295_v37 }
 0x1be   :  { %v291_v39 = vpop.f32.mrf.mxu1  ;;  %v424_v40 = vpop.f32.mrf.mxu0 }
 0x1bf   :  { %v292_v41 = vadd.f32 %v291_v39, %v263_v38  ;;  %v425_v42 = vadd.f32 %v424_v40, %v262_v33 }
 0x1c1   :  { %v298_v43 = vsel %vm294_vm3, %v292_v41, -inf  ;;  %v429_v44 = vsel %vm294_vm3, %v425_v42, -inf }
 0x1c2   :  { %299 = vmax.xlane.f32.xlu2 %v298_v43  ;;  %430 = vmax.xlane.f32.xlu0 %v429_v44 }
 0x1c4   :  { %v357_v45 = vpop.f32.mrf.mxu3 }
 0x1c5   :  { %v358_v46 = vadd.f32 %v357_v45, %v262_v33 }
 0x1c6   :  { %v426_v47 = vpop.f32.mrf.mxu0 }
 0x1c7   :  { %v427_v48 = vadd.f32 %v426_v47, %v263_v38  ;;  %v362_v50 = vsel %vm294_vm3, %v358_v46, -inf }
 0x1c9   :  { %v432_v49 = vsel %vm294_vm3, %v427_v48, -inf }
 0x1ca   :  { %433 = vmax.xlane.f32.xlu1 %v432_v49  ;;  %363 = vmax.xlane.f32.xlu0 %v362_v50 }
 0x1cc   :  { %v359_v51 = vpop.f32.mrf.mxu3 }
 0x1cd   :  { %v360_v52 = vadd.f32 %v359_v51, %v263_v38 }
 0x1cf   :  { %v365_v53 = vsel %vm294_vm3, %v360_v52, -inf }
 0x1d0   :  { %366 = vmax.xlane.f32.xlu2 %v365_v53 }
 0x1d4   :  { %v491_v54 = vpop.f32.mrf.mxu3 }
 0x1d5   :  { %v492_v55 = vadd.f32 %v491_v54, %v262_v33 }
 0x1d7   :  { %v496_v56 = vsel %vm294_vm3, %v492_v55, -inf }
 0x1d8   :  { %497 = vmax.xlane.f32.xlu1 %v496_v56 }
 0x1dc   :  { %v493_v57 = vpop.f32.mrf.mxu3 }
 0x1dd   :  { %v494_v58 = vadd.f32 %v493_v57, %v263_v38 }
 0x1df   :  { %v499_v59 = vsel %vm294_vm3, %v494_v58, -inf }
 0x1e0   :  { %500 = vmax.xlane.f32.xlu2 %v499_v59 }
 0x1f1   :  { %318 = vrot.lane.b32.xlu1 %v1511_v14, %s1361_s16  ;;  %s1382_s16 = smov 40  }
 0x1f8   :  { %385 = vrot.lane.b32.xlu2 %v1511_v14, %s1381_s0 }
 0x22d   :  { %v297_v60 = vpop.xlane.xlu1 %296 }
 0x22e   :  { %v301_v61 = vsub.f32 %v290_v36, %v297_v60 }
 0x230   :  { %v303_v62 = vmul.f32 1.442695, %v301_v61 }
 0x232   :  { %1060 = vpow2.f32 %v303_v62 }
 0x235   :  { %v300_v63 = vpop.xlane.xlu2 %299  ;;  %v431_v0 = vpop.xlane.xlu0 %430 }
 0x236   :  { %v302_v1 = vsub.f32 %v292_v41, %v300_v63  ;;  %v435_v4 = vsub.f32 %v425_v42, %v431_v0 }
 0x238   :  { %v1540_v5 = vpop.eup %1060  ;;  %v305_v6 = vmul.f32 1.442695, %v302_v1  ;;  %v437_v7 = vmul.f32 1.442695, %v435_v4 }
 0x239   :  { %v307_v8 = vsel %vm294_vm3, %v1540_v5, 0.0 }
 0x23a   :  { %1062 = vpow2.f32 %v305_v6  ;;  %308 = vadd.xlane.f32.xlu2 %v307_v8 }
 0x23b   :  { %1064 = vpow2.f32 %v437_v7 }
 0x23d   :  { %v434_v9 = vpop.xlane.xlu1 %433  ;;  %v364_v10 = vpop.xlane.xlu0 %363 }
 0x23e   :  { %v436_v11 = vsub.f32 %v427_v48, %v434_v9  ;;  %v368_v12 = vsub.f32 %v358_v46, %v364_v10 }
 0x240   :  { %v1063_v13 = vpop.eup %1062  ;;  %v439_v15 = vmul.f32 1.442695, %v436_v11  ;;  %v370_v16 = vmul.f32 1.442695, %v368_v12 }
 0x241   :  { %v1544_v17 = vpop.eup %1064  ;;  %v310_v18 = vsel %vm294_vm3, %v1063_v13, 0.0 }
 0x242   :  { %1066 = vpow2.f32 %v439_v15  ;;  %311 = vadd.xlane.f32.xlu0 %v310_v18  ;;  %v441_v19 = vsel %vm294_vm3, %v1544_v17, 0.0 }
 0x243   :  { %1068 = vpow2.f32 %v370_v16  ;;  %442 = vadd.xlane.f32.xlu1 %v441_v19  ;;  %v367_v20 = vpop.xlane.xlu2 %366 }
 0x244   :  { %v369_v21 = vsub.f32 %v360_v52, %v367_v20  ;;  %v1001_v20 = vld [vmem:[#allocation7 + $0x8] sm:$0xff] }
 0x245   :  { %600 = vmatpush.bf16.msra.mxu0 %v1001_v20  ;;  %v1054_v20 = vld [vmem:[%s1626_s5] ss:$0 sm:$0xff] }
 0x246   :  { %v372_v22 = vmul.f32 1.442695, %v369_v21  ;;  %v1000_v21 = vld [vmem:[#allocation7] sm:$0xff] }
 0x248   :  { %v1549_v23 = vpop.eup %1066  ;;  %1070 = vpow2.f32 %v372_v22 }
 0x249   :  { %v1069_v24 = vpop.eup %1068  ;;  %v444_v25 = vsel %vm294_vm3, %v1549_v23, 0.0  ;;  %601 = vmatpush.bf16.msra.mxu0 %v1000_v21 }
 0x24a   :  { %445 = vadd.xlane.f32.xlu0 %v444_v25  ;;  %v374_v26 = vsel %vm294_vm3, %v1069_v24, 0.0 }
 0x24b   :  { %375 = vadd.xlane.f32.xlu2 %v374_v26  ;;  %v498_v27 = vpop.xlane.xlu1 %497 }
 0x24c   :  { %v502_v28 = vsub.f32 %v492_v55, %v498_v27 }
 0x24e   :  { %v1071_v29 = vpop.eup %1070  ;;  %v504_v30 = vmul.f32 1.442695, %v502_v28 }
 0x24f   :  { %v377_v31 = vsel %vm294_vm3, %v1071_v29, 0.0 }
 0x250   :  { %1072 = vpow2.f32 %v504_v30 }
 0x252   :  { %378 = vadd.xlane.f32.xlu0 %v377_v31 }
 0x253   :  { %v501_v32 = vpop.xlane.xlu2 %500 }
 0x254   :  { %v503_v33 = vsub.f32 %v494_v58, %v501_v32 }
 0x256   :  { %v1073_v34 = vpop.eup %1072  ;;  %v506_v35 = vmul.f32 1.442695, %v503_v33 }
 0x257   :  { %v508_v36 = vsel %vm294_vm3, %v1073_v34, 0.0 }
 0x258   :  { %1074 = vpow2.f32 %v506_v35 }
 0x25a   :  { %509 = vadd.xlane.f32.xlu0 %v508_v36 }
 0x25b   :  { %v386_v40 = vpop.permute.xlu2 %385 }
 0x25e   :  { %v1075_v37 = vpop.eup %1074 }
 0x25f   :  { %v511_v38 = vsel %vm294_vm3, %v1075_v37, 0.0 }
 0x262   :  { %512 = vadd.xlane.f32.xlu0 %v511_v38  ;;  %v1053_v38 = vld [vmem:[%s1625_s4] ss:$0 sm:$0xff] }
 0x263   :  { %519 = vrot.lane.b32.xlu2 %v1511_v14, %s1382_s16  ;;  %v319_v39 = vpop.permute.xlu1 %318 }
 0x264   :  { %331 = vmatpush.bf16.msra.mxu2 %v319_v39 }
 0x268   :  { %398 = vmatpush.bf16.msrb.mxu2 %v386_v40 }
 0x276   :  { %452 = vrot.lane.b32.xlu0 %v1511_v14, %s1383_s22 }
 0x2ad   :  { %v309_v41 = vpop.xlane.xlu2 %308 }
 0x2ae   :  { %1076 = vrcp.f32 %v309_v41 }
 0x2b4   :  { %v1077_v43 = vpop.eup %1076 }
 0x2b5   :  { %v312_v42 = vpop.xlane.xlu0 %311  ;;  %v315_v46 = vmul.f32 %v1077_v43, %v1540_v5 }
 0x2b6   :  { %1078 = vrcp.f32 %v312_v42  ;;  %v443_v60 = vpop.xlane.xlu1 %442 }
 0x2bc   :  { %v1079_v44 = vpop.eup %1078 }
 0x2bd   :  { %v446_v45 = vpop.xlane.xlu0 %445  ;;  %v316_v47 = vmul.f32 %v1079_v44, %v1063_v13 }
 0x2be   :  { %v376_v48 = vpop.xlane.xlu2 %375 }
 0x2bf   :  { %v317_v49 = vpack.c.bf16 %v316_v47, %v315_v46  ;;  %1080 = vrcp.f32 %v376_v48  ;;  %v1386_v47 = vmov 32.0  }
 0x2c1   :  { %954 = vmatmul.msk.bf16.vlgmr.msra.gmra.mxu2 %vm294_vm3, %v317_v49 }
 0x2c5   :  { %v379_v50 = vpop.xlane.xlu0 %378  ;;  %v1081_v14 = vpop.eup %1080 }
 0x2c6   :  { %v520_v51 = vpop.permute.xlu2 %519  ;;  %1082 = vrcp.f32 %v379_v50  ;;  %v382_v53 = vmul.f32 %v1081_v14, %v1069_v24 }
 0x2c7   :  { %532 = vmatpush.bf16.msra.mxu2 %v520_v51 }
 0x2cc   :  { %v1083_v52 = vpop.eup %1082 }
 0x2cd   :  { %v383_v54 = vmul.f32 %v1083_v52, %v1071_v29  ;;  %v510_v55 = vpop.xlane.xlu0 %509 }
 0x2ce   :  { %1084 = vrcp.f32 %v510_v55 }
 0x2cf   :  { %v384_v56 = vpack.c.bf16 %v383_v54, %v382_v53 }
 0x2d1   :  { %956 = vmatmul.msk.bf16.vlgmr.msrb.gmra.mxu2 %vm294_vm3, %v384_v56 }
 0x2d4   :  { %v1085_v58 = vpop.eup %1084 }
 0x2d5   :  { %v513_v57 = vpop.xlane.xlu0 %512  ;;  %v516_v61 = vmul.f32 %v1085_v58, %v1073_v34 }
 0x2d6   :  { %1086 = vrcp.f32 %v513_v57 }
 0x2d7   :  { %1088 = vrcp.f32 %v446_v45 }
 0x2d8   :  { %1090 = vrcp.f32 %v443_v60 }
 0x2d9   :  { %1092 = vrcp.f32 %v1386_v47 }
 0x2dc   :  { %v1087_v59 = vpop.eup %1086 }
 0x2dd   :  { %v517_v62 = vmul.f32 %v1087_v59, %v1075_v37  ;;  %v1089_v0 = vpop.eup %1088 }
 0x2de   :  { %v1091_v1 = vpop.eup %1090  ;;  %v450_v4 = vmul.f32 %v1089_v0, %v1549_v23 }
 0x2df   :  { %v518_v63 = vpack.c.bf16 %v517_v62, %v516_v61  ;;  %v449_v5 = vmul.f32 %v1091_v1, %v1544_v17  ;;  %v1093_v48 = vpop.eup %1092  ;;  %v1003_v61 = vld [vmem:[#allocation10 + $0x8] sm:$0xff]  ;;  %v1002_v1 = vld [vmem:[#allocation10] sm:$0xff] }
 0x2e0   :  { %v619_v49 = vmul.f32 32.0, %v1093_v48  ;;  %vm623_vm6 = vweird.f32 %v1093_v48 }
 0x2e1   :  { %960 = vmatmul.msk.bf16.vlgmr.msra.gmra.mxu2 %vm294_vm3, %v518_v63  ;;  %v451_v7 = vpack.c.bf16 %v450_v4, %v449_v5 }
 0x2e2   :  { %v620_v50 = vsub.f32 1.0, %v619_v49 }
 0x2e4   :  { %v621_v51 = vmul.f32 %v1093_v48, %v620_v50  ;;  %v1007_v50 = vld [vmem:[#allocation13 + $0x18] sm:$0xff] }
 0x2e5   :  { %844 = vmatpush.bf16.msra.mxu3 %v1007_v50 }
 0x2e6   :  { %v622_v14 = vadd.f32 %v1093_v48, %v621_v51 }
 0x2e8   :  { %v453_v6 = vpop.permute.xlu0 %452  ;;  %v624_v52 = vsel %vm623_vm6, %v1093_v48, %v622_v14 }
 0x2e9   :  { %465 = vmatpush.bf16.msrb.mxu1 %v453_v6 }
 0x2ec   :  { %958 = vmatmul.msk.bf16.vlgmr.msrb.gmra.mxu1 %vm294_vm3, %v451_v7 }
 0x2ed   :  { %703 = vmatpush.bf16.msra.mxu1 %v1003_v61 }
 0x2f1   :  { %704 = vmatpush.bf16.msra.mxu1 %v1002_v1 }
 0x344   :  { %v333_v8 = vpop.f32.mrf.mxu2 }
 0x34c   :  { %v335_v9 = vpop.f32.mrf.mxu2 }
 0x354   :  { %v400_v10 = vpop.f32.mrf.mxu2 }
 0x35c   :  { %v402_v11 = vpop.f32.mrf.mxu2 }
 0x35d   :  { %v1037_v12 = vpack.i.bf16 %v402_v11, %v400_v10 }
 0x35f   :  { %1038 = vrot.lane.b32.xlu2 %v1037_v12, %s1368_s20 }
 0x364   :  { %v534_v13 = vpop.f32.mrf.mxu2 }
 0x369   :  { %v467_v15 = vpop.f32.mrf.mxu1 }
 0x36c   :  { %v536_v16 = vpop.f32.mrf.mxu2 }
 0x36d   :  { %v1047_v18 = vpack.i.bf16 %v536_v16, %v534_v13 }
 0x36f   :  { %1048 = vrot.lane.b32.xlu0 %v1047_v18, %s1384_s23 }
 0x371   :  { %v469_v19 = vpop.f32.mrf.mxu1 }
 0x372   :  { %v1042_v17 = vpack.i.bf16 %v469_v19, %v467_v15 }
 0x374   :  { %1043 = vrot.lane.b32.xlu2 %v1042_v17, %s1385_s3 }
 0x3b9   :  { %v1039_v22 = vpop.permute.xlu2 %1038 }
 0x3ba   :  { %v1041_v24 = vunpack.i.h.bf16 %v1039_v22  ;;  %v1040_v25 = vunpack.i.l.bf16 %v1039_v22 }
 0x3bc   :  { %v564_v29 = vsel %vm273_vm1, %v335_v9, %v1041_v24  ;;  %v563_v30 = vsel %vm273_vm1, %v333_v8, %v1040_v25  ;;  %v1055_v24 = vld [vmem:[#allocation8] ss:$0 sm:$0xff] }
 0x3ce   :  { %v1044_v23 = vpop.permute.xlu2 %1043 }
 0x3cf   :  { %v1046_v26 = vunpack.i.h.bf16 %v1044_v23  ;;  %v1045_v27 = vunpack.i.l.bf16 %v1044_v23 }
 0x3d1   :  { %v566_v33 = vsel %vm294_vm3, %v564_v29, %v1046_v26  ;;  %v565_v34 = vsel %vm294_vm3, %v563_v30, %v1045_v27 }
 0x3e1   :  { %v1049_v28 = vpop.permute.xlu0 %1048 }
 0x3e2   :  { %v1051_v31 = vunpack.i.h.bf16 %v1049_v28  ;;  %v1050_v32 = vunpack.i.l.bf16 %v1049_v28 }
 0x3e4   :  { %v569_v35 = vsel %vm567_vm5, %v566_v33, %v1051_v31  ;;  %v568_v36 = vsel %vm567_vm5, %v565_v34, %v1050_v32  ;;  %v1056_v31 = vld [vmem:[#allocation11] ss:$0 sm:$0xff]  ;;  %vm836_vm5 = vcmask 523264  }
 0x3e5   :  { %v570_v37 = vpack.c.bf16 %v569_v35, %v568_v36 }
 0x3e7   :  { %969 = vmatmul.msk.bf16.vlgmr.msra.gmra.mxu0 %vm201_vm0, %v570_v37 }
 0x464   :  { %v603_v39 = vpop.f32.mrf.mxu0 }
 0x465   :  { %v604_v40 = vadd.f32 %v1053_v38, %v603_v39 }
 0x467   :  { %v608_v41 = vadd.f32 %v604_v40, %v1501_v2 }
 0x469   :  { %v612_v42 = vsel %vm201_vm0, %v608_v41, 0.0 }
 0x46a   :  { %613 = vadd.xlane.f32.xlu2 %v612_v42 }
 0x46c   :  { %v605_v43 = vpop.f32.mrf.mxu0 }
 0x46d   :  { %v606_v44 = vadd.f32 %v1053_v38, %v605_v43 }
 0x46f   :  { %v609_v45 = vadd.f32 %v606_v44, %v1503_v3 }
 0x471   :  { %v615_v46 = vsel %vm201_vm0, %v609_v45, 0.0 }
 0x472   :  { %616 = vadd.xlane.f32.xlu1 %v615_v46 }
 0x4dd   :  { %v614_v2 = vpop.xlane.xlu2 %613 }
 0x4de   :  { %v625_v53 = vmul.f32 %v624_v52, %v614_v2 }
 0x4e0   :  { %v627_v54 = vsub.f32 %v608_v41, %v625_v53 }
 0x4e2   :  { %v629_v55 = vmul.f32 %v627_v54, %v627_v54 }
 0x4e4   :  { %v631_v56 = vsel %vm201_vm0, %v629_v55, 0.0 }
 0x4e5   :  { %v617_v57 = vpop.xlane.xlu1 %616  ;;  %632 = vadd.xlane.f32.xlu0 %v631_v56  ;;  %v1006_v56 = vld [vmem:[#allocation13 + $0x10] sm:$0xff] }
 0x4e6   :  { %v626_v3 = vmul.f32 %v624_v52, %v617_v57  ;;  %845 = vmatpush.bf16.msra.mxu3 %v1006_v56  ;;  %v1057_v56 = vld [vmem:[#allocation14] ss:$0 sm:$0xff] }
 0x4e8   :  { %v628_v58 = vsub.f32 %v609_v45, %v626_v3 }
 0x4ea   :  { %v630_v59 = vmul.f32 %v628_v58, %v628_v58 }
 0x4ec   :  { %v634_v60 = vsel %vm201_vm0, %v630_v59, 0.0 }
 0x4ed   :  { %635 = vadd.xlane.f32.xlu1 %v634_v60 }
 0x558   :  { %v633_v62 = vpop.xlane.xlu0 %632 }
 0x559   :  { %v637_v63 = vmul.f32 %v633_v62, %v624_v52 }
 0x55b   :  { %v639_v0 = vadd.f32 1e-05, %v637_v63  ;;  %v1005_v63 = vld [vmem:[#allocation13 + $0x8] sm:$0xff] }
 0x55c   :  { %846 = vmatpush.bf16.msra.mxu3 %v1005_v63  ;;  %v1387_v63 = vmov 64.0  }
 0x55d   :  { %1094 = vrsqrt.f32 %v639_v0  ;;  %vm647_vm8 = vweird.f32 %v639_v0 }
 0x560   :  { %v636_v4 = vpop.xlane.xlu1 %635 }
 0x561   :  { %v638_v5 = vmul.f32 %v636_v4, %v624_v52 }
 0x563   :  { %v1095_v6 = vpop.eup %1094  ;;  %v640_v7 = vadd.f32 1e-05, %v638_v5 }
 0x564   :  { %v642_v8 = vmul.f32 %v1095_v6, %v639_v0  ;;  %vm648_vm7 = vweird.f32 %v1095_v6 }
 0x565   :  { %1096 = vrsqrt.f32 %v640_v7  ;;  %vm649_vm9 = vmor %vm647_vm8, %vm648_vm7  ;;  %vm657_vm11 = vweird.f32 %v640_v7 }
 0x566   :  { %v643_v9 = vmul.f32 %v1095_v6, %v642_v8 }
 0x568   :  { %v644_v10 = vmul.f32 0.5, %v643_v9 }
 0x56a   :  { %v645_v11 = vsub.f32 1.5, %v644_v10 }
 0x56b   :  { %v1097_v12 = vpop.eup %1096 }
 0x56c   :  { %v646_v13 = vmul.f32 %v1095_v6, %v645_v11  ;;  %v652_v15 = vmul.f32 %v1097_v12, %v640_v7  ;;  %vm658_vm10 = vweird.f32 %v1097_v12  ;;  %v1004_v7 = vld [vmem:[#allocation13] sm:$0xff] }
 0x56d   :  { %vm659_vm12 = vmor %vm657_vm11, %vm658_vm10  ;;  %847 = vmatpush.bf16.msra.mxu3 %v1004_v7 }
 0x56e   :  { %v653_v16 = vmul.f32 %v1097_v12, %v652_v15  ;;  %v650_v18 = vsel %vm649_vm9, %v1095_v6, %v646_v13 }
 0x56f   :  { %v661_v21 = vmul.f32 %v650_v18, %v627_v54 }
 0x570   :  { %v654_v19 = vmul.f32 0.5, %v653_v16 }
 0x571   :  { %v666_v25 = vmul.f32 %v1054_v20, %v661_v21 }
 0x572   :  { %v655_v17 = vsub.f32 1.5, %v654_v19 }
 0x573   :  { %v671_v28 = vadd.f32 %v1055_v24, %v666_v25 }
 0x574   :  { %v656_v22 = vmul.f32 %v1097_v12, %v655_v17 }
 0x576   :  { %v660_v23 = vsel %vm659_vm12, %v1097_v12, %v656_v22 }
 0x577   :  { %v662_v26 = vmul.f32 %v660_v23, %v628_v58 }
 0x579   :  { %v667_v27 = vmul.f32 %v1054_v20, %v662_v26 }
 0x57b   :  { %v672_v29 = vadd.f32 %v1055_v24, %v667_v27 }
 0x57d   :  { %v673_v30 = vpack.c.bf16 %v672_v29, %v671_v28 }
 0x57f   :  { %978 = vmatmul.msk.bf16.vlgmr.msra.gmra.mxu1 %vm201_vm0, %v673_v30 }
 0x5fc   :  { %v706_v32 = vpop.f32.mrf.mxu1 }
 0x5fd   :  { %v1585_v33 = vadd.f32 %v1056_v31, %v706_v32 }
 0x5ff   :  { %v1588_v34 = vmul.f32 0.70710677, %v1585_v33 }
 0x601   :  { %v715_v35 = vmul.f32 %v1588_v34, %v1588_v34 }
 0x603   :  { %v716_v36 = vmin.f32 %v715_v35, 16.0 }
 0x604   :  { %v708_v37 = vpop.f32.mrf.mxu1 }
 0x605   :  { %v717_v38 = vmul.f32 2.1237322e-06, %v716_v36  ;;  %v728_v39 = vmul.f32 3.8918573e-05, %v716_v36  ;;  %v1592_v40 = vadd.f32 %v1056_v31, %v708_v37 }
 0x607   :  { %v718_v41 = vadd.f32 0.00028619796, %v717_v38  ;;  %v729_v42 = vadd.f32 0.001143296, %v728_v39  ;;  %v1595_v43 = vmul.f32 0.70710677, %v1592_v40 }
 0x609   :  { %v730_v44 = vmul.f32 %v729_v42, %v716_v36  ;;  %v755_v45 = vmul.f32 %v1595_v43, %v1595_v43  ;;  %v719_v46 = vmul.f32 %v718_v41, %v716_v36 }
 0x60b   :  { %v731_v47 = vadd.f32 0.014752088, %v730_v44  ;;  %v756_v48 = vmin.f32 %v755_v45, 16.0  ;;  %v720_v52 = vadd.f32 0.0036580483, %v719_v46 }
 0x60d   :  { %v732_v49 = vmul.f32 %v731_v47, %v716_v36  ;;  %v757_v51 = vmul.f32 2.1237322e-06, %v756_v48  ;;  %v768_v14 = vmul.f32 3.8918573e-05, %v756_v48  ;;  %v721_v58 = vmul.f32 %v720_v52, %v716_v36 }
 0x60e   :  { %v712_v52 = vmul.f32 0.5, %v1592_v40 }
 0x60f   :  { %v733_v2 = vadd.f32 0.112945676, %v732_v49  ;;  %v758_v53 = vadd.f32 0.00028619796, %v757_v51  ;;  %v769_v54 = vadd.f32 0.001143296, %v768_v14 }
 0x610   :  { %v722_v1 = vadd.f32 0.05243302, %v721_v58  ;;  %v711_v14 = vmul.f32 0.5, %v1585_v33 }
 0x611   :  { %v734_v55 = vmul.f32 %v733_v2, %v716_v36  ;;  %v759_v57 = vmul.f32 %v758_v53, %v756_v48  ;;  %v770_v3 = vmul.f32 %v769_v54, %v756_v48 }
 0x612   :  { %v723_v9 = vmul.f32 %v722_v1, %v716_v36 }
 0x613   :  { %v735_v59 = vadd.f32 0.4994258, %v734_v55  ;;  %v760_v60 = vadd.f32 0.0036580483, %v759_v57  ;;  %v771_v61 = vadd.f32 0.014752088, %v770_v3 }
 0x614   :  { %v724_v15 = vadd.f32 0.18741608, %v723_v9 }
 0x615   :  { %v736_v62 = vmul.f32 %v735_v59, %v716_v36  ;;  %v772_v0 = vmul.f32 %v771_v61, %v756_v48  ;;  %v761_v5 = vmul.f32 %v760_v60, %v756_v48 }
 0x616   :  { %v725_v20 = vmul.f32 %v724_v15, %v716_v36 }
 0x617   :  { %v737_v4 = vadd.f32 1.0, %v736_v62  ;;  %v773_v6 = vadd.f32 0.112945676, %v772_v0  ;;  %v762_v10 = vadd.f32 0.05243302, %v761_v5 }
 0x618   :  { %v726_v26 = vadd.f32 1.1283791, %v725_v20 }
 0x619   :  { %1098 = vrcp.f32 %v737_v4  ;;  %v774_v8 = vmul.f32 %v773_v6, %v756_v48  ;;  %v763_v18 = vmul.f32 %v762_v10, %v756_v48  ;;  %v749_v22 = vand.u32 2147483648, %v737_v4 }
 0x61a   :  { %v747_v24 = vand.u32 2147483647, %v737_v4  ;;  %vm743_vm14 = vweird.f32 %v737_v4  ;;  %v727_v35 = vmul.f32 %v726_v26, %v1588_v34 }
 0x61b   :  { %v775_v11 = vadd.f32 0.4994258, %v774_v8  ;;  %v764_v23 = vadd.f32 0.18741608, %v763_v18  ;;  %v750_v29 = vor.u32 1.1754944e-38, %v749_v22 }
 0x61c   :  { %vm748_vm0 = vcmp.eq.f32.partialorder %v747_v24, 8.507059e+37 }
 0x61d   :  { %v776_v12 = vmul.f32 %v775_v11, %v756_v48  ;;  %v765_v30 = vmul.f32 %v764_v23, %v756_v48 }
 0x61f   :  { %v1099_v13 = vpop.eup %1098  ;;  %v777_v19 = vadd.f32 1.0, %v776_v12  ;;  %v766_v36 = vadd.f32 1.1283791, %v765_v30 }
 0x620   :  { %v739_v16 = vmul.f32 %v1099_v13, %v737_v4  ;;  %vm744_vm13 = vweird.f32 %v1099_v13 }
 0x621   :  { %1100 = vrcp.f32 %v777_v19  ;;  %vm745_vm15 = vmor %vm743_vm14, %vm744_vm13  ;;  %v789_v38 = vand.u32 2147483648, %v777_v19  ;;  %v787_v42 = vand.u32 2147483647, %v777_v19  ;;  %vm783_vm2 = vweird.f32 %v777_v19 }
 0x622   :  { %v740_v17 = vsub.f32 1.0, %v739_v16  ;;  %v767_v47 = vmul.f32 %v766_v36, %v1595_v43  ;;  %1102 = vrcp.f32 %v1387_v63  ;;  %v1059_v36 = vld [vmem:[#allocation16] ss:$0 sm:$0xff] }
 0x623   :  { %v790_v45 = vor.u32 1.1754944e-38, %v789_v38  ;;  %vm788_vm4 = vcmp.eq.f32.partialorder %v787_v42, 8.507059e+37 }
 0x624   :  { %v741_v21 = vmul.f32 %v1099_v13, %v740_v17 }
 0x626   :  { %v742_v25 = vadd.f32 %v1099_v13, %v741_v21 }
 0x627   :  { %v1101_v27 = vpop.eup %1100 }
 0x628   :  { %v746_v28 = vsel %vm745_vm15, %v1099_v13, %v742_v25  ;;  %v779_v31 = vmul.f32 %v1101_v27, %v777_v19  ;;  %vm784_vm1 = vweird.f32 %v1101_v27  ;;  %v1103_v0 = vpop.eup %1102 }
 0x629   :  { %v751_v32 = vsel %vm748_vm0, %v750_v29, %v746_v28  ;;  %vm785_vm3 = vmor %vm783_vm2, %vm784_vm1  ;;  %v865_v1 = vmul.f32 64.0, %v1103_v0  ;;  %vm869_vm6 = vweird.f32 %v1103_v0 }
 0x62a   :  { %v780_v37 = vsub.f32 1.0, %v779_v31  ;;  %v752_v39 = vmul.f32 %v751_v32, %v727_v35  ;;  %v1058_v31 = vld [vmem:[%s1632_s11] ss:$0 sm:$0xff] }
 0x62b   :  { %v866_v4 = vsub.f32 1.0, %v865_v1 }
 0x62c   :  { %v781_v41 = vmul.f32 %v1101_v27, %v780_v37  ;;  %v979_v46 = vclamps-f32 %v752_v39, 1.0 }
 0x62d   :  { %v867_v5 = vmul.f32 %v1103_v0, %v866_v4 }
 0x62e   :  { %v782_v44 = vadd.f32 %v1101_v27, %v781_v41  ;;  %v795_v51 = vadd.f32 1.0, %v979_v46 }
 0x62f   :  { %v868_v6 = vadd.f32 %v1103_v0, %v867_v5 }
 0x630   :  { %v786_v48 = vsel %vm785_vm3, %v1101_v27, %v782_v44  ;;  %v797_v53 = vmul.f32 %v795_v51, %v711_v14 }
 0x631   :  { %v791_v49 = vsel %vm788_vm4, %v790_v45, %v786_v48  ;;  %v870_v7 = vsel %vm869_vm6, %v1103_v0, %v868_v6 }
 0x632   :  { %v792_v50 = vmul.f32 %v791_v49, %v767_v47 }
 0x634   :  { %v980_v34 = vclamps-f32 %v792_v50, 1.0 }
 0x636   :  { %v796_v2 = vadd.f32 1.0, %v980_v34 }
 0x638   :  { %v798_v54 = vmul.f32 %v796_v2, %v712_v52 }
 0x63a   :  { %v799_v55 = vpack.c.bf16 %v798_v54, %v797_v53 }
 0x63c   :  { %997 = vmatmul.msk.bf16.vlgmr.msra.gmra.mxu3 %vm836_vm5, %v799_v55 }
 0x6bf   :  { %v849_v57 = vpop.f32.mrf.mxu3 }
 0x6c0   :  { %v850_v43 = vadd.f32 %v1057_v56, %v849_v57 }
 0x6c2   :  { %v854_v3 = vadd.f32 %v850_v43, %v1585_v33 }
 0x6c4   :  { %v858_v58 = vsel %vm836_vm5, %v854_v3, 0.0 }
 0x6c5   :  { %859 = vadd.xlane.f32.xlu1 %v858_v58 }
 0x6c7   :  { %v851_v59 = vpop.f32.mrf.mxu3 }
 0x6c8   :  { %v852_v60 = vadd.f32 %v1057_v56, %v851_v59 }
 0x6ca   :  { %v855_v61 = vadd.f32 %v852_v60, %v1592_v40 }
 0x6cc   :  { %v861_v62 = vsel %vm836_vm5, %v855_v61, 0.0 }
 0x6cd   :  { %862 = vadd.xlane.f32.xlu1 %v861_v62 }
 0x738   :  { %v860_v33 = vpop.xlane.xlu1 %859 }
 0x739   :  { %v871_v8 = vmul.f32 %v870_v7, %v860_v33 }
 0x73b   :  { %v873_v9 = vsub.f32 %v854_v3, %v871_v8 }
 0x73d   :  { %v875_v10 = vmul.f32 %v873_v9, %v873_v9 }
 0x73f   :  { %v877_v11 = vsel %vm836_vm5, %v875_v10, 0.0 }
 0x740   :  { %878 = vadd.xlane.f32.xlu1 %v877_v11  ;;  %v863_v40 = vpop.xlane.xlu1 %862 }
 0x741   :  { %v872_v12 = vmul.f32 %v870_v7, %v863_v40 }
 0x743   :  { %v874_v13 = vsub.f32 %v855_v61, %v872_v12 }
 0x745   :  { %v876_v15 = vmul.f32 %v874_v13, %v874_v13 }
 0x747   :  { %v880_v16 = vsel %vm836_vm5, %v876_v15, 0.0 }
 0x748   :  { %881 = vadd.xlane.f32.xlu2 %v880_v16 }
 0x7b3   :  { %v879_v18 = vpop.xlane.xlu1 %878 }
 0x7b4   :  { %v883_v19 = vmul.f32 %v879_v18, %v870_v7 }
 0x7b6   :  { %v885_v17 = vadd.f32 1e-05, %v883_v19 }
 0x7b8   :  { %1104 = vrsqrt.f32 %v885_v17  ;;  %vm893_vm8 = vweird.f32 %v885_v17 }
 0x7bb   :  { %v882_v20 = vpop.xlane.xlu2 %881 }
 0x7bc   :  { %v884_v21 = vmul.f32 %v882_v20, %v870_v7 }
 0x7be   :  { %v1105_v22 = vpop.eup %1104  ;;  %v886_v23 = vadd.f32 1e-05, %v884_v21 }
 0x7bf   :  { %v888_v24 = vmul.f32 %v1105_v22, %v885_v17  ;;  %vm894_vm7 = vweird.f32 %v1105_v22 }
 0x7c0   :  { %1106 = vrsqrt.f32 %v886_v23  ;;  %vm895_vm9 = vmor %vm893_vm8, %vm894_vm7  ;;  %vm903_vm11 = vweird.f32 %v886_v23 }
 0x7c1   :  { %v889_v25 = vmul.f32 %v1105_v22, %v888_v24 }
 0x7c3   :  { %v890_v26 = vmul.f32 0.5, %v889_v25 }
 0x7c5   :  { %v891_v27 = vsub.f32 1.5, %v890_v26 }
 0x7c6   :  { %v1107_v28 = vpop.eup %1106 }
 0x7c7   :  { %v892_v29 = vmul.f32 %v1105_v22, %v891_v27  ;;  %v898_v30 = vmul.f32 %v1107_v28, %v886_v23  ;;  %vm904_vm10 = vweird.f32 %v1107_v28 }
 0x7c8   :  { %vm905_vm12 = vmor %vm903_vm11, %vm904_vm10 }
 0x7c9   :  { %v896_v32 = vsel %vm895_vm9, %v1105_v22, %v892_v29  ;;  %v899_v35 = vmul.f32 %v1107_v28, %v898_v30 }
 0x7ca   :  { %v907_v37 = vmul.f32 %v896_v32, %v873_v9 }
 0x7cb   :  { %v900_v38 = vmul.f32 0.5, %v899_v35 }
 0x7cc   :  { %v912_v39 = vmul.f32 %v1058_v31, %v907_v37 }
 0x7cd   :  { %v901_v41 = vsub.f32 1.5, %v900_v38 }
 0x7ce   :  { %v917_v42 = vadd.f32 %v1059_v36, %v912_v39 }
 0x7cf   :  { %v902_v44 = vmul.f32 %v1107_v28, %v901_v41 }
 0x7d0   :  { %919 = vst.msk [vmem:[#allocation17] sm:$0xff] %vm836_vm5, %v917_v42 }
 0x7d1   :  { %v906_v45 = vsel %vm905_vm12, %v1107_v28, %v902_v44 }
 0x7d2   :  { %v908_v46 = vmul.f32 %v906_v45, %v874_v13 }
 0x7d4   :  { %v913_v47 = vmul.f32 %v1058_v31, %v908_v46 }
 0x7d6   :  { %v918_v48 = vadd.f32 %v1059_v36, %v913_v47 }
 0x7d8   :  { %920 = vst.msk [vmem:[#allocation17 + $0x8] sm:$0xff] %vm836_vm5, %v918_v48 }
 0x7d9   :  { %933 = dma.vmem_to_hbm [thread:$0]  %s926_s7, 256, %s928_s29, [#allocation4], %s1367_s19, %s1367_s19, %s1368_s20  }
 0x7da   :  { %1358 = dma.done.wait [#allocation4], 256  }
 0x7db   :  { %1359 = vsyncadd [#allocation4], 4294967040 }
 0x7dc   :  { %938 = vsyncpa [#allocation3], 1 }
 0x7dd   :  { %939 = vsyncpa [#allocation6], 1 }
 0x7de   :  { %940 = vsyncpa [#allocation9], 1 }
 0x7df   :  { %941 = vsyncpa [#allocation12], 1 }
 0x7e0   :  { %942 = vsyncpa [#allocation15], 1 }
 0x7e1   :  { %943 = vsyncpa [#allocation4], 1 }

</bundles_post_ra>
